<compile_context>
chip_gen: v7x
topology: tpu7x:2x2x1
jax: 0.10.0
libtpu: 0.0.40
codegen_flags: <defaults>
</compile_context>

<pallas_src>
import numpy as np
import jax
import jax.numpy as jnp
from jax import lax
from jax.experimental import pallas as pl
from jax.experimental.pallas import tpu as pltpu

BN_EPS = 1e-5      # nn.BatchNorm1d default eps
NORM_EPS = 1e-12   # F.normalize default eps
LANE = 128         # TPU vreg lane width


def _round_up(x, m):
    return (x + m - 1) // m * m


# --------------------------------------------------------------------------
# Kernel
# --------------------------------------------------------------------------
def _make_kernel(n_dir_hidden, n_mag_hidden, dir_h1_pad):
    """Ref order:
       x_a, embed_ab,
       fused first layer: W1a, W1b, shift1              (both branches, concat on N),
       dir:  [W, shift] * (n_dir_hidden - 1), W_final,
       mag:  [W, shift] * (n_mag_hidden - 1), w_final_row,
       out
    """
    assert n_dir_hidden >= 1 and n_mag_hidden >= 1

    def kernel(*refs):
        out_ref = refs[-1]
        # Batch tile of the two inputs; cast once to bf16 for the MXU.
        xa_bf = refs[0][...].astype(jnp.bfloat16)
        xe_bf = refs[1][...].astype(jnp.bfloat16)

        pos = [2]

        def take(n):
            r = refs[pos[0]:pos[0] + n]
            pos[0] += n
            return r

        # ---- fused first hidden layer of BOTH branches (2 matmuls, not 4) ----
        w1a, w1b, shift1 = take(3)
        h1 = jnp.dot(xa_bf, w1a[...], preferred_element_type=jnp.float32)
        h1 = h1 + jnp.dot(xe_bf, w1b[...], preferred_element_type=jnp.float32)
        # TODO(synk): Dropout(p=0.2) is identity in eval mode; not modeled.
        h1 = jnp.maximum(h1 + shift1[...], 0.0)
        # Split back into the two branches on a 128-lane boundary (no masked copy).
        h_dir = h1[:, :dir_h1_pad]
        h_mag = h1[:, dir_h1_pad:]

        def hidden(h, w_ref, shift_ref):
            h = jnp.dot(h.astype(jnp.bfloat16), w_ref[...],
                        preferred_element_type=jnp.float32)
            return jnp.maximum(h + shift_ref[...], 0.0)

        # ---- direction branch ------------------------------------------------
        h = h_dir
        for _ in range(n_dir_hidden - 1):
            w, s = take(2)
            h = hidden(h, w, s)
        (w_dir_last,) = take(1)                      # (d_pad, out_pad) bf16, no bias
        dir_vec = jnp.dot(h.astype(jnp.bfloat16), w_dir_last[...],
                          preferred_element_type=jnp.float32)
        # Zero-padded lanes are exactly 0 -> sumsq / normalize unchanged.
        sumsq = jnp.sum(dir_vec * dir_vec, axis=1, keepdims=True)
        # F.normalize: x / max(||x||, eps)  ==  x * rsqrt(max(||x||^2, eps^2))
        inv_nrm = lax.rsqrt(jnp.maximum(sumsq, NORM_EPS * NORM_EPS))
        dir_vec = dir_vec * inv_nrm

        # ---- magnitude branch ------------------------------------------------
        h = h_mag
        for _ in range(n_mag_hidden - 1):
            w, s = take(2)
            h = hidden(h, w, s)
        (w_mag_row,) = take(1)                       # (1, d_last_pad) f32 row
        # Final (d -> 1) layer as a VPU multiply + lane reduce (no N=1 MXU pass).
        magnitude = jnp.sum(h * w_mag_row[...], axis=1, keepdims=True)

        out = dir_vec * magnitude
        if out_ref.shape[-1] != out.shape[-1]:       # non-lane-dense store path
            out = out[:, :out_ref.shape[-1]]
        out_ref[...] = out.astype(out_ref.dtype)

    return kernel


# --------------------------------------------------------------------------
# Wrapper helpers: BN/bias folding, lane padding, first-layer fusion, tiling
# --------------------------------------------------------------------------
def _prepare_kernel_params(dir_params, mag_params, split_dim):
    """dir_params/mag_params: per hidden layer (w, b, s, t) then final (w,).
    Folds eval-mode BN + Linear bias into (W' = W*s, shift' = b*s + t),
    zero-pads every hidden / output width to a multiple of 128 lanes, fuses the
    two branches' first layers along N, and splits that fused weight at
    `split_dim` rows so the wrapper-level torch.cat disappears."""

    def fold(params):
        n_hidden = (len(params) - 1) // 4
        hid = []
        for li in range(n_hidden):
            w, b, s, t = params[4 * li: 4 * li + 4]
            hid.append((w * s, (b * s + t).astype(jnp.float32)))
        return hid, jnp.asarray(params[4 * n_hidden])

    def pad_cols(a, to):
        return jnp.pad(a, ((0, 0), (0, to - a.shape[1])))

    def pad_rows(a, to):
        return jnp.pad(a, ((0, to - a.shape[0]), (0, 0)))

    dir_hid, dir_last = fold(dir_params)
    mag_hid, mag_last = fold(mag_params)

    # Fused first layer: [W1_dir (padded) | W1_mag] along N, rows split at split_dim.
    (w1d, s1d), (w1m, s1m) = dir_hid[0], mag_hid[0]
    dir_h1_pad = _round_up(w1d.shape[1], LANE)
    mag_h1_pad = _round_up(w1m.shape[1], LANE)
    w1 = jnp.concatenate([pad_cols(w1d, dir_h1_pad), pad_cols(w1m, mag_h1_pad)], axis=1)
    s1 = jnp.concatenate([pad_cols(s1d, dir_h1_pad), pad_cols(s1m, mag_h1_pad)], axis=1)
    kparams = [w1[:split_dim].astype(jnp.bfloat16),
               w1[split_dim:].astype(jnp.bfloat16),
               s1.astype(jnp.float32)]

    def append_branch(hid, last, prev_pad, final_as_row):
        for w, shift in hid[1:]:
            w_pad = _round_up(w.shape[1], LANE)
            kparams.append(pad_cols(pad_rows(w, prev_pad), w_pad).astype(jnp.bfloat16))
            kparams.append(pad_cols(shift, w_pad).astype(jnp.float32))
            prev_pad = w_pad
        if final_as_row:
            # (d_last, 1) -> (1, d_last_pad) f32 row (VPU multiply + reduce).
            kparams.append(pad_cols(last.T, prev_pad).astype(jnp.float32))
            return None
        out_pad = _round_up(last.shape[1], LANE)
        kparams.append(pad_cols(pad_rows(last, prev_pad), out_pad).astype(jnp.bfloat16))
        return out_pad

    out_pad = append_branch(dir_hid, dir_last, dir_h1_pad, final_as_row=False)
    append_branch(mag_hid, mag_last, mag_h1_pad, final_as_row=True)

    return kparams, len(dir_hid), len(mag_hid), dir_h1_pad, out_pad


def _choose_tile(B, tm_max):
    """Batch tile: as large as possible (amortize per-step overhead, feed the
    MXU M rows), multiple of 8 sublanes, >=2 grid steps when B allows it
    (v7x megacore sharding), and <=~10% batch-padding waste."""
    tm = min(tm_max, _round_up(B, 8))
    if B >= 16 and pl.cdiv(B, tm) < 2:
        tm = _round_up(pl.cdiv(B, 2), 8)     # give both v7x TensorCores work
    while tm > 8 and (_round_up(B, tm) - B) * 10 > B:
        tm = _round_up(max(tm // 2, 8), 8)   # shrink to cap padded-row waste
    return tm


def mlp_latent_mapper(x_a, embed_ab, dir_params, mag_params, *, out_dim,
                      tm=1024, lane_dense_output=True):
    """lane_dense_output=True stores a 128-lane-padded output block (unmasked
    vst; clear win on v6e/v7x).  On v5e's lower HBM BW + single store slot the
    4x output traffic may lose: set lane_dense_output=False there and benchmark."""
    B, da = x_a.shape
    de = embed_ab.shape[1]

    kparams, n_dir_hidden, n_mag_hidden, dir_h1_pad, out_pad = \
        _prepare_kernel_params(dir_params, mag_params, da)

    tm = _choose_tile(B, tm)
    B_pad = _round_up(B, tm)
    if B_pad != B:
        pad = B_pad - B
        x_a = jnp.pad(x_a, ((0, pad), (0, 0)))
        embed_ab = jnp.pad(embed_ab, ((0, pad), (0, 0)))
    n_steps = B_pad // tm
    grid = (n_steps,)

    # Deeper pipelining on the batch-streamed refs once there is grid depth to
    # use it; weights/shifts stay VMEM-resident (constant index_map), so no
    # re-DMA concern and VMEM stays far below the 32 MiB limit.
    pipe = pl.Buffered(3) if n_steps >= 3 else None

    def batch_spec(d):
        if pipe is None:
            return pl.BlockSpec((tm, d), lambda i: (i, 0))
        return pl.BlockSpec((tm, d), lambda i: (i, 0), pipeline_mode=pipe)

    def resident_spec(arr):
        return pl.BlockSpec(tuple(arr.shape), lambda i: (0, 0))

    out_w = out_pad if lane_dense_output else out_dim
    in_specs = [batch_spec(da), batch_spec(de)] + [resident_spec(p) for p in kparams]
    out_specs = batch_spec(out_w)

    kernel = _make_kernel(n_dir_hidden, n_mag_hidden, dir_h1_pad)
    out = pl.pallas_call(
        kernel,
        grid=grid,
        out_shape=jax.ShapeDtypeStruct((B_pad, out_w), x_a.dtype),
        in_specs=in_specs,
        out_specs=out_specs,
        compiler_params=pltpu.CompilerParams(
            dimension_semantics=("parallel",),      # v7x: two TCs share the grid
            vmem_limit_bytes=32 * 1024 * 1024,      # safe on v5e/v6e/v7x
        ),
    )(x_a, embed_ab, *kparams)
    return out[:B, :out_dim]


# --------------------------------------------------------------------------
# Synthetic params + pure-JAX reference (PyTorch eval-mode semantics)
# --------------------------------------------------------------------------
def build_mlp_params(key, in_dim, out_channels):
    """Deterministic synthetic init mirroring
    MLP(in_feat_dims, out_channels, b_norm=True, remove_final_bias=True).
    Eval-mode BatchNorm stats are pre-reduced to (scale, shift)."""
    params = []
    dims = [in_dim] + list(out_channels)
    n = len(out_channels)
    for i in range(n):
        key, kw, kb, kbn = jax.random.split(key, 4)
        fan_in, fan_out = dims[i], dims[i + 1]
        bound = 1.0 / (fan_in ** 0.5)
        w = jax.random.uniform(kw, (fan_in, fan_out), jnp.float32, -bound, bound)
        if i == n - 1:
            params.append(w)                       # final layer: no bias, no BN
        else:
            b = jax.random.uniform(kb, (1, fan_out), jnp.float32, -bound, bound)
            kg, kbt, km, kv = jax.random.split(kbn, 4)
            gamma = 1.0 + 0.1 * jax.random.normal(kg, (1, fan_out), jnp.float32)
            beta = 0.1 * jax.random.normal(kbt, (1, fan_out), jnp.float32)
            running_mean = 0.1 * jax.random.normal(km, (1, fan_out), jnp.float32)
            running_var = jax.random.uniform(kv, (1, fan_out), jnp.float32, 0.5, 1.5)
            s = gamma / jnp.sqrt(running_var + BN_EPS)
            t = beta - running_mean * s
            params += [w, b, s, t]
    return params


def reference_forward(x_a, embed_ab, dir_params, mag_params, n_dir_hidden, n_mag_hidden):
    """Pure-JAX f32 reference mirroring the PyTorch forward (eval mode)."""
    x = jnp.concatenate([x_a, embed_ab], axis=1)

    def run(params, n_hidden):
        h = x
        idx = 0
        for _ in range(n_hidden):
            w, b, s, t = params[idx:idx + 4]
            idx += 4
            h = jnp.maximum((h @ w + b) * s + t, 0.0)
        return h @ params[idx]

    d = run(dir_params, n_dir_hidden)
    d = d / jnp.maximum(jnp.sqrt(jnp.sum(d * d, axis=1, keepdims=True)), NORM_EPS)
    m = run(mag_params, n_mag_hidden)
    return d * m


if __name__ == "__main__":
    # Small shapes consistent with the module's forward.
    shape_latent_dim = 32
    text_embed_dim = 32
    num_layers = 3                      # dir_mlp out_channels = [32, 32, 32]
    mag_channels = [256, 128, 64, 1]

    key = jax.random.PRNGKey(0)
    kx, ke, kd, km = jax.random.split(key, 4)
    in_dim = shape_latent_dim + text_embed_dim
    dir_params = build_mlp_params(kd, in_dim, [shape_latent_dim] * num_layers)
    mag_params = build_mlp_params(km, in_dim, mag_channels)

    # Tolerance accounts for bf16 MXU weights/inputs (accumulation stays f32).
    for B in (8, 40):                   # single-tile and multi-step-grid paths
        kxb, keb = jax.random.fold_in(kx, B), jax.random.fold_in(ke, B)
        x_a = jax.random.normal(kxb, (B, shape_latent_dim), jnp.float32)
        embed_ab = jax.random.normal(keb, (B, text_embed_dim), jnp.float32)

        out = mlp_latent_mapper(x_a, embed_ab, dir_params, mag_params,
                                out_dim=shape_latent_dim)
        out = jax.block_until_ready(out)

        ref = reference_forward(x_a, embed_ab, dir_params, mag_params,
                                num_layers - 1, len(mag_channels) - 1)
        np.testing.assert_allclose(np.asarray(out), np.asarray(ref),
                                   rtol=1e-2, atol=1e-2)

    print("KERNEL_OK")
</pallas_src>

<mosaic_0001>
module attributes {stable_mosaic.version = 11 : i64} {
  func.func @kernel(%arg0: i32, %arg1: memref<8x32xf32, #tpu.memory_space<vmem>>, %arg2: memref<8x32xf32, #tpu.memory_space<vmem>>, %arg3: memref<32x384xbf16, #tpu.memory_space<vmem>>, %arg4: memref<32x384xbf16, #tpu.memory_space<vmem>>, %arg5: memref<1x384xf32, #tpu.memory_space<vmem>>, %arg6: memref<128x128xbf16, #tpu.memory_space<vmem>>, %arg7: memref<1x128xf32, #tpu.memory_space<vmem>>, %arg8: memref<128x128xbf16, #tpu.memory_space<vmem>>, %arg9: memref<256x128xbf16, #tpu.memory_space<vmem>>, %arg10: memref<1x128xf32, #tpu.memory_space<vmem>>, %arg11: memref<128x128xbf16, #tpu.memory_space<vmem>>, %arg12: memref<1x128xf32, #tpu.memory_space<vmem>>, %arg13: memref<1x128xf32, #tpu.memory_space<vmem>>, %arg14: memref<8x128xf32, #tpu.memory_space<vmem>>) attributes {dimension_semantics = [#tpu.dimension_semantics<parallel>], iteration_bounds = array<i64: 1>, scalar_prefetch = 0 : i64, scratch_operands = 0 : i64, tpu.core_type = #tpu.core_type<tc>, window_params = [{transform_indices = @transform_0, window_bounds = array<i64: 8, 32>}, {transform_indices = @transform_1, window_bounds = array<i64: 8, 32>}, {pipeline_mode = #tpu.pipeline_mode<synchronous>, transform_indices = @transform_2, window_bounds = array<i64: 32, 384>}, {pipeline_mode = #tpu.pipeline_mode<synchronous>, transform_indices = @transform_3, window_bounds = array<i64: 32, 384>}, {pipeline_mode = #tpu.pipeline_mode<synchronous>, transform_indices = @transform_4, window_bounds = array<i64: 1, 384>}, {pipeline_mode = #tpu.pipeline_mode<synchronous>, transform_indices = @transform_5, window_bounds = array<i64: 128, 128>}, {pipeline_mode = #tpu.pipeline_mode<synchronous>, transform_indices = @transform_6, window_bounds = array<i64: 1, 128>}, {pipeline_mode = #tpu.pipeline_mode<synchronous>, transform_indices = @transform_7, window_bounds = array<i64: 128, 128>}, {pipeline_mode = #tpu.pipeline_mode<synchronous>, transform_indices = @transform_8, window_bounds = array<i64: 256, 128>}, {pipeline_mode = #tpu.pipeline_mode<synchronous>, transform_indices = @transform_9, window_bounds = array<i64: 1, 128>}, {pipeline_mode = #tpu.pipeline_mode<synchronous>, transform_indices = @transform_10, window_bounds = array<i64: 128, 128>}, {pipeline_mode = #tpu.pipeline_mode<synchronous>, transform_indices = @transform_11, window_bounds = array<i64: 1, 128>}, {pipeline_mode = #tpu.pipeline_mode<synchronous>, transform_indices = @transform_12, window_bounds = array<i64: 1, 128>}, {transform_indices = @transform_13, window_bounds = array<i64: 8, 128>}]} {
    %c0 = arith.constant 0 : index
    %c0_0 = arith.constant 0 : index
    %0 = vector.load %arg1[%c0, %c0_0] : memref<8x32xf32, #tpu.memory_space<vmem>>, vector<8x32xf32>
    %1 = arith.truncf %0 : vector<8x32xf32> to vector<8x32xbf16>
    %c0_1 = arith.constant 0 : index
    %c0_2 = arith.constant 0 : index
    %2 = vector.load %arg2[%c0_1, %c0_2] : memref<8x32xf32, #tpu.memory_space<vmem>>, vector<8x32xf32>
    %3 = arith.truncf %2 : vector<8x32xf32> to vector<8x32xbf16>
    %c0_3 = arith.constant 0 : index
    %c0_4 = arith.constant 0 : index
    %4 = vector.load %arg3[%c0_3, %c0_4] : memref<32x384xbf16, #tpu.memory_space<vmem>>, vector<32x384xbf16>
    %cst = arith.constant dense<0.000000e+00> : vector<8x384xf32>
    %5 = tpu.matmul %1, %4, %cst {dimension_numbers = #tpu.dot_dimension_numbers<[1], [0], [0], [1], [0, 0, 1, 1], [], []>} : vector<8x32xbf16>, vector<32x384xbf16>, vector<8x384xf32> -> vector<8x384xf32>
    %c0_5 = arith.constant 0 : index
    %c0_6 = arith.constant 0 : index
    %6 = vector.load %arg4[%c0_5, %c0_6] : memref<32x384xbf16, #tpu.memory_space<vmem>>, vector<32x384xbf16>
    %cst_7 = arith.constant dense<0.000000e+00> : vector<8x384xf32>
    %7 = tpu.matmul %3, %6, %cst_7 {dimension_numbers = #tpu.dot_dimension_numbers<[1], [0], [0], [1], [0, 0, 1, 1], [], []>} : vector<8x32xbf16>, vector<32x384xbf16>, vector<8x384xf32> -> vector<8x384xf32>
    %8 = arith.addf %5, %7 : vector<8x384xf32>
    %c0_8 = arith.constant 0 : index
    %c0_9 = arith.constant 0 : index
    %9 = vector.load %arg5[%c0_8, %c0_9] : memref<1x384xf32, #tpu.memory_space<vmem>>, vector<1x384xf32>
    %10 = vector.broadcast %9 : vector<1x384xf32> to vector<8x384xf32>
    %11 = arith.addf %8, %10 : vector<8x384xf32>
    %cst_10 = arith.constant 0.000000e+00 : f32
    %12 = vector.broadcast %cst_10 : f32 to vector<8x384xf32>
    %13 = arith.maximumf %11, %12 : vector<8x384xf32>
    %14 = vector.extract_strided_slice %13 {offsets = [0, 0], sizes = [8, 128], strides = [1, 1]} : vector<8x384xf32> to vector<8x128xf32>
    %15 = vector.extract_strided_slice %13 {offsets = [0, 128], sizes = [8, 256], strides = [1, 1]} : vector<8x384xf32> to vector<8x256xf32>
    %16 = arith.truncf %14 : vector<8x128xf32> to vector<8x128xbf16>
    %c0_11 = arith.constant 0 : index
    %c0_12 = arith.constant 0 : index
    %17 = vector.load %arg6[%c0_11, %c0_12] : memref<128x128xbf16, #tpu.memory_space<vmem>>, vector<128x128xbf16>
    %cst_13 = arith.constant dense<0.000000e+00> : vector<8x128xf32>
    %18 = tpu.matmul %16, %17, %cst_13 {dimension_numbers = #tpu.dot_dimension_numbers<[1], [0], [0], [1], [0, 0, 1, 1], [], []>} : vector<8x128xbf16>, vector<128x128xbf16>, vector<8x128xf32> -> vector<8x128xf32>
    %c0_14 = arith.constant 0 : index
    %c0_15 = arith.constant 0 : index
    %19 = vector.load %arg7[%c0_14, %c0_15] : memref<1x128xf32, #tpu.memory_space<vmem>>, vector<1x128xf32>
    %20 = vector.broadcast %19 : vector<1x128xf32> to vector<8x128xf32>
    %21 = arith.addf %18, %20 : vector<8x128xf32>
    %cst_16 = arith.constant 0.000000e+00 : f32
    %22 = vector.broadcast %cst_16 : f32 to vector<8x128xf32>
    %23 = arith.maximumf %21, %22 : vector<8x128xf32>
    %24 = arith.truncf %23 : vector<8x128xf32> to vector<8x128xbf16>
    %c0_17 = arith.constant 0 : index
    %c0_18 = arith.constant 0 : index
    %25 = vector.load %arg8[%c0_17, %c0_18] : memref<128x128xbf16, #tpu.memory_space<vmem>>, vector<128x128xbf16>
    %cst_19 = arith.constant dense<0.000000e+00> : vector<8x128xf32>
    %26 = tpu.matmul %24, %25, %cst_19 {dimension_numbers = #tpu.dot_dimension_numbers<[1], [0], [0], [1], [0, 0, 1, 1], [], []>} : vector<8x128xbf16>, vector<128x128xbf16>, vector<8x128xf32> -> vector<8x128xf32>
    %27 = arith.mulf %26, %26 : vector<8x128xf32>
    %cst_20 = arith.constant dense<0.000000e+00> : vector<8xf32>
    %28 = vector.multi_reduction <add>, %27, %cst_20 [1] : vector<8x128xf32> to vector<8xf32>
    %29 = vector.shape_cast %28 : vector<8xf32> to vector<8x1xf32>
    %cst_21 = arith.constant 1.000000e-24 : f32
    %30 = vector.broadcast %cst_21 : f32 to vector<8x1xf32>
    %31 = arith.maximumf %29, %30 : vector<8x1xf32>
    %32 = math.rsqrt %31 : vector<8x1xf32>
    %33 = vector.broadcast %32 : vector<8x1xf32> to vector<8x128xf32>
    %34 = arith.mulf %26, %33 : vector<8x128xf32>
    %35 = arith.truncf %15 : vector<8x256xf32> to vector<8x256xbf16>
    %c0_22 = arith.constant 0 : index
    %c0_23 = arith.constant 0 : index
    %36 = vector.load %arg9[%c0_22, %c0_23] : memref<256x128xbf16, #tpu.memory_space<vmem>>, vector<256x128xbf16>
    %cst_24 = arith.constant dense<0.000000e+00> : vector<8x128xf32>
    %37 = tpu.matmul %35, %36, %cst_24 {dimension_numbers = #tpu.dot_dimension_numbers<[1], [0], [0], [1], [0, 0, 1, 1], [], []>} : vector<8x256xbf16>, vector<256x128xbf16>, vector<8x128xf32> -> vector<8x128xf32>
    %c0_25 = arith.constant 0 : index
    %c0_26 = arith.constant 0 : index
    %38 = vector.load %arg10[%c0_25, %c0_26] : memref<1x128xf32, #tpu.memory_space<vmem>>, vector<1x128xf32>
    %39 = vector.broadcast %38 : vector<1x128xf32> to vector<8x128xf32>
    %40 = arith.addf %37, %39 : vector<8x128xf32>
    %cst_27 = arith.constant 0.000000e+00 : f32
    %41 = vector.broadcast %cst_27 : f32 to vector<8x128xf32>
    %42 = arith.maximumf %40, %41 : vector<8x128xf32>
    %43 = arith.truncf %42 : vector<8x128xf32> to vector<8x128xbf16>
    %c0_28 = arith.constant 0 : index
    %c0_29 = arith.constant 0 : index
    %44 = vector.load %arg11[%c0_28, %c0_29] : memref<128x128xbf16, #tpu.memory_space<vmem>>, vector<128x128xbf16>
    %cst_30 = arith.constant dense<0.000000e+00> : vector<8x128xf32>
    %45 = tpu.matmul %43, %44, %cst_30 {dimension_numbers = #tpu.dot_dimension_numbers<[1], [0], [0], [1], [0, 0, 1, 1], [], []>} : vector<8x128xbf16>, vector<128x128xbf16>, vector<8x128xf32> -> vector<8x128xf32>
    %c0_31 = arith.constant 0 : index
    %c0_32 = arith.constant 0 : index
    %46 = vector.load %arg12[%c0_31, %c0_32] : memref<1x128xf32, #tpu.memory_space<vmem>>, vector<1x128xf32>
    %47 = vector.broadcast %46 : vector<1x128xf32> to vector<8x128xf32>
    %48 = arith.addf %45, %47 : vector<8x128xf32>
    %cst_33 = arith.constant 0.000000e+00 : f32
    %49 = vector.broadcast %cst_33 : f32 to vector<8x128xf32>
    %50 = arith.maximumf %48, %49 : vector<8x128xf32>
    %c0_34 = arith.constant 0 : index
    %c0_35 = arith.constant 0 : index
    %51 = vector.load %arg13[%c0_34, %c0_35] : memref<1x128xf32, #tpu.memory_space<vmem>>, vector<1x128xf32>
    %52 = vector.broadcast %51 : vector<1x128xf32> to vector<8x128xf32>
    %53 = arith.mulf %50, %52 : vector<8x128xf32>
    %cst_36 = arith.constant dense<0.000000e+00> : vector<8xf32>
    %54 = vector.multi_reduction <add>, %53, %cst_36 [1] : vector<8x128xf32> to vector<8xf32>
    %55 = vector.shape_cast %54 : vector<8xf32> to vector<8x1xf32>
    %56 = vector.broadcast %55 : vector<8x1xf32> to vector<8x128xf32>
    %57 = arith.mulf %34, %56 : vector<8x128xf32>
    %c0_37 = arith.constant 0 : index
    %c0_38 = arith.constant 0 : index
    %58 = vector.load %arg14[%c0_37, %c0_38] : memref<8x128xf32, #tpu.memory_space<vmem>>, vector<8x128xf32>
    tpu.vector_store %arg14[%c0_37, %c0_38], %57 {strides = array<i32>} : memref<8x128xf32, #tpu.memory_space<vmem>>, vector<8x128xf32>,
    return
  }
  func.func @transform_0(%arg0: i32) -> (i32, i32) {
    %c0_i32 = arith.constant 0 : i32
    %c0_i32_0 = arith.constant 0 : i32
    return %arg0, %c0_i32 : i32, i32
  }
  func.func @transform_1(%arg0: i32) -> (i32, i32) {
    %c0_i32 = arith.constant 0 : i32
    %c0_i32_0 = arith.constant 0 : i32
    return %arg0, %c0_i32 : i32, i32
  }
  func.func @transform_2(%arg0: i32) -> (i32, i32) {
    %c0_i32 = arith.constant 0 : i32
    %c0_i32_0 = arith.constant 0 : i32
    %c0_i32_1 = arith.constant 0 : i32
    return %c0_i32, %c0_i32_0 : i32, i32
  }
  func.func @transform_3(%arg0: i32) -> (i32, i32) {
    %c0_i32 = arith.constant 0 : i32
    %c0_i32_0 = arith.constant 0 : i32
    %c0_i32_1 = arith.constant 0 : i32
    return %c0_i32, %c0_i32_0 : i32, i32
  }
  func.func @transform_4(%arg0: i32) -> (i32, i32) {
    %c0_i32 = arith.constant 0 : i32
    %c0_i32_0 = arith.constant 0 : i32
    %c0_i32_1 = arith.constant 0 : i32
    return %c0_i32, %c0_i32_0 : i32, i32
  }
  func.func @transform_5(%arg0: i32) -> (i32, i32) {
    %c0_i32 = arith.constant 0 : i32
    %c0_i32_0 = arith.constant 0 : i32
    %c0_i32_1 = arith.constant 0 : i32
    return %c0_i32, %c0_i32_0 : i32, i32
  }
  func.func @transform_6(%arg0: i32) -> (i32, i32) {
    %c0_i32 = arith.constant 0 : i32
    %c0_i32_0 = arith.constant 0 : i32
    %c0_i32_1 = arith.constant 0 : i32
    return %c0_i32, %c0_i32_0 : i32, i32
  }
  func.func @transform_7(%arg0: i32) -> (i32, i32) {
    %c0_i32 = arith.constant 0 : i32
    %c0_i32_0 = arith.constant 0 : i32
    %c0_i32_1 = arith.constant 0 : i32
    return %c0_i32, %c0_i32_0 : i32, i32
  }
  func.func @transform_8(%arg0: i32) -> (i32, i32) {
    %c0_i32 = arith.constant 0 : i32
    %c0_i32_0 = arith.constant 0 : i32
    %c0_i32_1 = arith.constant 0 : i32
    return %c0_i32, %c0_i32_0 : i32, i32
  }
  func.func @transform_9(%arg0: i32) -> (i32, i32) {
    %c0_i32 = arith.constant 0 : i32
    %c0_i32_0 = arith.constant 0 : i32
    %c0_i32_1 = arith.constant 0 : i32
    return %c0_i32, %c0_i32_0 : i32, i32
  }
  func.func @transform_10(%arg0: i32) -> (i32, i32) {
    %c0_i32 = arith.constant 0 : i32
    %c0_i32_0 = arith.constant 0 : i32
    %c0_i32_1 = arith.constant 0 : i32
    return %c0_i32, %c0_i32_0 : i32, i32
  }
  func.func @transform_11(%arg0: i32) -> (i32, i32) {
    %c0_i32 = arith.constant 0 : i32
    %c0_i32_0 = arith.constant 0 : i32
    %c0_i32_1 = arith.constant 0 : i32
    return %c0_i32, %c0_i32_0 : i32, i32
  }
  func.func @transform_12(%arg0: i32) -> (i32, i32) {
    %c0_i32 = arith.constant 0 : i32
    %c0_i32_0 = arith.constant 0 : i32
    %c0_i32_1 = arith.constant 0 : i32
    return %c0_i32, %c0_i32_0 : i32, i32
  }
  func.func @transform_13(%arg0: i32) -> (i32, i32) {
    %c0_i32 = arith.constant 0 : i32
    %c0_i32_0 = arith.constant 0 : i32
    return %arg0, %c0_i32 : i32, i32
  }
}

</mosaic_0001>

<bundles_post_ra>
// kernel: tpu_custom_call.1
= control target key start
LH: loop header
LB: loop body
LE: loop exit
PB: predicated region body
PF: predicated region fallthrough
CT: control target
= control target key end

     0   :  { %18 = vsyncpa [#allocation3], 0  ;;  %s1731_s0 = inlined_call_operand.hbm [shape: f32[8,32], index: 0, kind: input, shape index: {}]   ;;  %s1732_s1 = inlined_call_operand.hbm [shape: f32[8,32], index: 1, kind: input, shape index: {}]   ;;  %s1733_s2 = inlined_call_operand.hbm [shape: bf16[32,384], index: 2, kind: input, shape index: {}]   ;;  %s1734_s3 = inlined_call_operand.hbm [shape: bf16[32,384], index: 3, kind: input, shape index: {}]   ;;  %s1735_s4 = inlined_call_operand.vmem [shape: f32[1,384], index: 4, kind: input, shape index: {}]   ;;  %s1736_s5 = inlined_call_operand.hbm [shape: bf16[128,128], index: 5, kind: input, shape index: {}]   ;;  %s1737_s6 = inlined_call_operand.vmem [shape: f32[1,128], index: 6, kind: input, shape index: {}]   ;;  %s1738_s7 = inlined_call_operand.hbm [shape: bf16[128,128], index: 7, kind: input, shape index: {}]   ;;  %s1739_s8 = inlined_call_operand.hbm [shape: bf16[256,128], index: 8, kind: input, shape index: {}]   ;;  %s1740_s9 = inlined_call_operand.vmem [shape: f32[1,128], index: 9, kind: input, shape index: {}]   ;;  %s1741_s10 = inlined_call_operand.hbm [shape: bf16[128,128], index: 10, kind: input, shape index: {}]   ;;  %s1742_s11 = inlined_call_operand.vmem [shape: f32[1,128], index: 11, kind: input, shape index: {}]   ;;  %s1743_s12 = inlined_call_operand.vmem [shape: f32[1,128], index: 12, kind: input, shape index: {}]   ;;  %s1744_s13 = inlined_call_operand.hbm [shape: f32[8,128], index: 13, kind: output, shape index: {}]  }
   0x1   :  { %19 = vsyncpa [#allocation6], 0 }
   0x2   :  { %20 = vsyncpa [#allocation9], 0 }
   0x3   :  { %21 = vsyncpa [#allocation12], 0 }
   0x4   :  { %22 = vsyncpa [#allocation15], 0 }
   0x5   :  { %23 = vsyncpa [#allocation4], 0  ;;  %s1448_s25 = smov [#allocation5]   ;;  %s1238_s29 = scalar_lea.hbm %s1732_s1, 128 }
   0x6   :  { %s40_s26 = sshll.u32 %s1448_s25, 4  ;;  %p1239_p0 = scmp.ne.s32.totalorder %s1732_s1, %s1238_s29  ;;  %s41_s26 = int_to_ptr.vmem [resolvable:$true] %s40_s26 }
   0x7   :  { %p1242_p1 = scmp.lt.u32.totalorder %s1238_s29, %s1732_s1 }
   0x9   :  { %p1244_p2 = pnand %p1242_p1, %p1239_p0 }
   0xb   :  { %1247 = shalt.err (!%p1244_p2)
}
   0xc   :  { %s1248_s17 = scalar_lea.vmem %s41_s26, 128  ;;  %p1253_p4 = scmp.lt.s32.totalorder %s41_s26, %s41_s26 }
   0xd   :  { %p1249_p3 = scmp.ne.s32.totalorder %s41_s26, %s1248_s17  ;;  %p1254_p5 = scmp.lt.s32.totalorder %s1248_s17, %s1248_s17 }
   0xf   :  { %p1255_p6 = por %p1254_p5, %p1253_p4 }
  0x11   :  { %p1256_p7 = pnand %p1255_p6, %p1249_p3 }
  0x13   :  { %1259 = shalt.err (!%p1256_p7)
}
  0x14   :  { %43 = dma.hbm_to_vmem [thread:$0]  %s1732_s1, 128, %s41_s26, [#allocation6]  }
  0x15   :  { %s1449_s20 = smov [#allocation8]   ;;  %s1260_s24 = scalar_lea.hbm %s1734_s3, 768 }
  0x16   :  { %s61_s21 = sshll.u32 %s1449_s20, 4  ;;  %p1261_p8 = scmp.ne.s32.totalorder %s1734_s3, %s1260_s24  ;;  %s62_s21 = int_to_ptr.vmem [resolvable:$true] %s61_s21 }
  0x17   :  { %p1264_p9 = scmp.lt.u32.totalorder %s1260_s24, %s1734_s3 }
  0x19   :  { %p1266_p10 = pnand %p1264_p9, %p1261_p8 }
  0x1b   :  { %1269 = shalt.err (!%p1266_p10)
}
  0x1c   :  { %s1270_s30 = scalar_lea.vmem %s62_s21, 768  ;;  %p1275_p12 = scmp.lt.s32.totalorder %s62_s21, %s62_s21 }
  0x1d   :  { %p1271_p11 = scmp.ne.s32.totalorder %s62_s21, %s1270_s30  ;;  %p1276_p13 = scmp.lt.s32.totalorder %s1270_s30, %s1270_s30 }
  0x1f   :  { %p1277_p0 = por %p1276_p13, %p1275_p12 }
  0x21   :  { %p1278_p1 = pnand %p1277_p0, %p1271_p11 }
  0x23   :  { %1281 = shalt.err (!%p1278_p1)
}
  0x24   :  { %s1450_s1 = smov 192   ;;  %s1451_s26 = smov 12  }
  0x25   :  { %67 = dma.hbm_to_vmem [thread:$0]  %s1734_s3, 768, %s62_s21, [#allocation9], %s1450_s1, %s1450_s1, %s1451_s26  }
  0x26   :  { %s1452_s16 = smov [#allocation11]   ;;  %s1453_s18 = smov [#allocation2]  }
  0x27   :  { %s89_s17 = sshll.u32 %s1452_s16, 4  ;;  %s30_s19 = sshll.u32 %s1453_s18, 4  ;;  %s90_s17 = int_to_ptr.vmem [resolvable:$true] %s89_s17  ;;  %s31_s19 = int_to_ptr.vmem [resolvable:$true] %s30_s19 }
  0x28   :  { %s1282_s23 = scalar_lea.hbm %s1738_s7, 1024 }
  0x29   :  { %p1283_p2 = scmp.ne.s32.totalorder %s1738_s7, %s1282_s23  ;;  %p1286_p3 = scmp.lt.u32.totalorder %s1282_s23, %s1738_s7 }
  0x2b   :  { %p1288_p4 = pnand %p1286_p3, %p1283_p2 }
  0x2d   :  { %1291 = shalt.err (!%p1288_p4)
}
  0x2e   :  { %s1292_s3 = scalar_lea.vmem %s90_s17, 1024  ;;  %p1297_p6 = scmp.lt.s32.totalorder %s90_s17, %s90_s17 }
  0x2f   :  { %p1293_p5 = scmp.ne.s32.totalorder %s90_s17, %s1292_s3  ;;  %p1298_p7 = scmp.lt.s32.totalorder %s1292_s3, %s1292_s3 }
  0x31   :  { %p1299_p8 = por %p1298_p7, %p1297_p6 }
  0x33   :  { %p1300_p9 = pnand %p1299_p8, %p1293_p5 }
  0x35   :  { %1303 = shalt.err (!%p1300_p9)
}
  0x36   :  { %s1454_s21 = smov 64   ;;  %s1455_s29 = smov 4  }
  0x37   :  { %95 = dma.hbm_to_vmem [thread:$0]  %s1738_s7, 1024, %s90_s17, [#allocation12], %s1454_s21, %s1454_s21, %s1455_s29  }
  0x38   :  { %s1304_s18 = scalar_lea.hbm %s1731_s0, 128 }
  0x39   :  { %p1305_p10 = scmp.ne.s32.totalorder %s1731_s0, %s1304_s18  ;;  %p1308_p11 = scmp.lt.u32.totalorder %s1304_s18, %s1731_s0 }
  0x3b   :  { %p1310_p12 = pnand %p1308_p11, %p1305_p10 }
  0x3d   :  { %1313 = shalt.err (!%p1310_p12)
}
  0x3e   :  { %s1314_s25 = scalar_lea.vmem %s31_s19, 128  ;;  %p1319_p0 = scmp.lt.s32.totalorder %s31_s19, %s31_s19 }
  0x3f   :  { %p1315_p13 = scmp.ne.s32.totalorder %s31_s19, %s1314_s25  ;;  %p1320_p1 = scmp.lt.s32.totalorder %s1314_s25, %s1314_s25 }
  0x41   :  { %p1321_p2 = por %p1320_p1, %p1319_p0 }
  0x43   :  { %p1322_p3 = pnand %p1321_p2, %p1315_p13 }
  0x45   :  { %1325 = shalt.err (!%p1322_p3)
}
  0x46   :  { %33 = dma.hbm_to_vmem [thread:$0]  %s1731_s0, 128, %s31_s19, [#allocation3]  }
  0x47   :  { %s1456_s27 = smov [#allocation7]   ;;  %s1457_s3 = smov [#allocation10]  }
  0x48   :  { %s49_s28 = sshll.u32 %s1456_s27, 4  ;;  %s75_s30 = sshll.u32 %s1457_s3, 4  ;;  %s50_s28 = int_to_ptr.vmem [resolvable:$true] %s49_s28  ;;  %s1588_s30 = int_to_ptr.vmem [resolvable:$true] %s75_s30 }
  0x49   :  { %s1326_s16 = scalar_lea.hbm %s1733_s2, 768 }
  0x4a   :  { %p1327_p4 = scmp.ne.s32.totalorder %s1733_s2, %s1326_s16  ;;  %p1330_p5 = scmp.lt.u32.totalorder %s1326_s16, %s1733_s2 }
  0x4c   :  { %p1332_p6 = pnand %p1330_p5, %p1327_p4 }
  0x4e   :  { %1335 = shalt.err (!%p1332_p6)
}
  0x4f   :  { %s1336_s0 = scalar_lea.vmem %s50_s28, 768  ;;  %p1341_p8 = scmp.lt.s32.totalorder %s50_s28, %s50_s28 }
  0x50   :  { %p1337_p7 = scmp.ne.s32.totalorder %s50_s28, %s1336_s0  ;;  %p1342_p9 = scmp.lt.s32.totalorder %s1336_s0, %s1336_s0 }
  0x52   :  { %p1343_p10 = por %p1342_p9, %p1341_p8 }
  0x54   :  { %p1344_p11 = pnand %p1343_p10, %p1337_p7 }
  0x56   :  { %1347 = shalt.err (!%p1344_p11)
}
  0x57   :  { %55 = dma.hbm_to_vmem [thread:$0]  %s1733_s2, 768, %s50_s28, [#allocation6], %s1450_s1, %s1450_s1, %s1451_s26  }
  0x58   :  { %s1348_s17 = scalar_lea.hbm %s1736_s5, 1024 }
  0x59   :  { %p1349_p12 = scmp.ne.s32.totalorder %s1736_s5, %s1348_s17  ;;  %p1352_p13 = scmp.lt.u32.totalorder %s1348_s17, %s1736_s5 }
  0x5b   :  { %p1354_p0 = pnand %p1352_p13, %p1349_p12 }
  0x5d   :  { %1357 = shalt.err (!%p1354_p0)
}
  0x5e   :  { %s1358_s16 = scalar_lea.vmem %s1588_s30, 1024  ;;  %p1363_p2 = scmp.lt.s32.totalorder %s1588_s30, %s1588_s30 }
  0x5f   :  { %p1359_p1 = scmp.ne.s32.totalorder %s1588_s30, %s1358_s16  ;;  %p1364_p3 = scmp.lt.s32.totalorder %s1358_s16, %s1358_s16 }
  0x61   :  { %p1365_p4 = por %p1364_p3, %p1363_p2 }
  0x63   :  { %p1366_p5 = pnand %p1365_p4, %p1359_p1 }
  0x65   :  { %1369 = shalt.err (!%p1366_p5)
}
  0x66   :  { %81 = dma.hbm_to_vmem [thread:$0]  %s1736_s5, 1024, %s1588_s30, [#allocation9], %s1454_s21, %s1454_s21, %s1455_s29  }
  0x67   :  { %s1458_s26 = smov [#allocation13]   ;;  %s1459_s18 = smov [#allocation14]  }
  0x68   :  { %s101_s28 = sshll.u32 %s1458_s26, 4  ;;  %s115_s20 = sshll.u32 %s1459_s18, 4  ;;  %s102_s28 = int_to_ptr.vmem [resolvable:$true] %s101_s28  ;;  %s1625_s20 = int_to_ptr.vmem [resolvable:$true] %s115_s20 }
  0x69   :  { %s1370_s0 = scalar_lea.hbm %s1739_s8, 2048 }
  0x6a   :  { %p1371_p6 = scmp.ne.s32.totalorder %s1739_s8, %s1370_s0  ;;  %p1374_p7 = scmp.lt.u32.totalorder %s1370_s0, %s1739_s8 }
  0x6c   :  { %p1376_p8 = pnand %p1374_p7, %p1371_p6 }
  0x6e   :  { %1379 = shalt.err (!%p1376_p8)
}
  0x6f   :  { %s1380_s5 = scalar_lea.vmem %s102_s28, 2048  ;;  %p1385_p10 = scmp.lt.s32.totalorder %s102_s28, %s102_s28 }
  0x70   :  { %p1381_p9 = scmp.ne.s32.totalorder %s102_s28, %s1380_s5  ;;  %p1386_p11 = scmp.lt.s32.totalorder %s1380_s5, %s1380_s5 }
  0x72   :  { %p1387_p12 = por %p1386_p11, %p1385_p10 }
  0x74   :  { %p1388_p13 = pnand %p1387_p12, %p1381_p9 }
  0x76   :  { %1391 = shalt.err (!%p1388_p13)
}
  0x77   :  { %107 = dma.hbm_to_vmem [thread:$0]  %s1739_s8, 2048, %s102_s28, [#allocation12], %s1454_s21, %s1454_s21, %s1455_s29  }
  0x78   :  { %s1392_s14 = scalar_lea.hbm %s1741_s10, 1024 }
  0x79   :  { %p1393_p0 = scmp.ne.s32.totalorder %s1741_s10, %s1392_s14  ;;  %p1396_p1 = scmp.lt.u32.totalorder %s1392_s14, %s1741_s10 }
  0x7b   :  { %p1398_p2 = pnand %p1396_p1, %p1393_p0 }
  0x7d   :  { %1401 = shalt.err (!%p1398_p2)
}
  0x7e   :  { %s1402_s26 = scalar_lea.vmem %s1625_s20, 1024  ;;  %p1407_p4 = scmp.lt.s32.totalorder %s1625_s20, %s1625_s20 }
  0x7f   :  { %p1403_p3 = scmp.ne.s32.totalorder %s1625_s20, %s1402_s26  ;;  %p1408_p5 = scmp.lt.s32.totalorder %s1402_s26, %s1402_s26 }
  0x81   :  { %p1409_p6 = por %p1408_p5, %p1407_p4 }
  0x83   :  { %p1410_p7 = pnand %p1409_p6, %p1403_p3 }
  0x85   :  { %1413 = shalt.err (!%p1410_p7)
}
  0x86   :  { %121 = dma.hbm_to_vmem [thread:$0]  %s1741_s10, 1024, %s1625_s20, [#allocation15], %s1454_s21, %s1454_s21, %s1455_s29  }
  0x87   :  { %1436 = dma.done.wait [#allocation3], 128  }
  0x88   :  { %1437 = vsyncadd [#allocation3], 4294967168 }
  0x89   :  { %1438 = dma.done.wait [#allocation6], 896  }
  0x8a   :  { %1439 = vsyncadd [#allocation6], 4294966400 }
  0x8b   :  { %1440 = dma.done.wait [#allocation9], 1792  }
  0x8c   :  { %1441 = vsyncadd [#allocation9], 4294965504 }
  0x8d   :  { %1442 = dma.done.wait [#allocation12], 3072  }
  0x8e   :  { %1443 = vsyncadd [#allocation12], 4294964224 }
  0x8f   :  { %1444 = dma.done.wait [#allocation15], 1024  }
  0x90   :  { %1445 = vsyncadd [#allocation15], 4294966272  ;;  %v1460_v0 = vmov 0   ;;  %v1461_v1 = vmov 0.0   ;;  %vm1462_vm0 = vmmov 0   ;;  %v153_v6 = vld [vmem:[#allocation5] sm:$0xff]  ;;  %v406_v33 = vlaneseq }
  0x91   :  { %239 = vmatprep.mubr.bf16.mxu0 %v1460_v0  ;;  %1088 = vmatprep.subr.bf16.mxu1 %v1461_v1  ;;  %v1180_v2 = vld [vmem:[#allocation8 + $0x4] ss:$12 sps:$4 sm:$0xff]   ;;  %v1182_v3 = vld [vmem:[#allocation8] ss:$12 sps:$4 sm:$0xff]   ;;  %v1183_v4 = vld [vmem:[#allocation8 + $0x1c] ss:$12 sps:$4 sm:$0xff]   ;;  %v154_v9 = vpack.c.bf16 %v153_v6, %v153_v6 }
  0x92   :  { %1092 = vmatprep.mubr.msk.bf16.mxu1 %vm1462_vm0, %v1461_v1  ;;  %207 = vmatprep.subr.bf16.mxu0 %v1180_v2  ;;  %v1185_v5 = vld [vmem:[#allocation8 + $0x18] ss:$12 sps:$4 sm:$0xff]   ;;  %v1188_v7 = vld [vmem:[#allocation7 + $0x4] ss:$12 sps:$4 sm:$0xff]   ;;  %vm203_vm1 = vcmask 261120   ;;  %v1199_v21 = vld [vmem:[#allocation10 + $0x18] sm:$0xff]  }
  0x93   :  { %208 = vmatpush1.bf16.msra.mxu0 %v1182_v3  ;;  %v1186_v8 = vld [vmem:[#allocation7] ss:$12 sps:$4 sm:$0xff]   ;;  %v1192_v10 = vld [vmem:[#allocation8 + $0x8] ss:$12 sps:$4 sm:$0xff]   ;;  %v1191_v11 = vld [vmem:[#allocation7 + $0x1c] ss:$12 sps:$4 sm:$0xff]  }
  0x94   :  { %209 = vmatprep.subr.bf16.mxu0 %v1183_v4  ;;  %1089 = vmatpush3.bf16.msra.mxu1 %v1192_v10  ;;  %v1193_v12 = vld [vmem:[#allocation8 + $0x20] ss:$12 sps:$4 sm:$0xff]   ;;  %v1189_v13 = vld [vmem:[#allocation7 + $0x18] ss:$12 sps:$4 sm:$0xff]   ;;  %v1194_v15 = vld [vmem:[#allocation7 + $0x8] ss:$12 sps:$4 sm:$0xff]  }
  0x95   :  { %1090 = vmatprep.subr.bf16.mxu1 %v1461_v1  ;;  %v151_v14 = vld [vmem:[#allocation2] sm:$0xff]  ;;  %v1196_v16 = vld [vmem:[#allocation10] sm:$0xff]   ;;  %v1197_v19 = vld [vmem:[#allocation10 + $0x8] sm:$0xff]   ;;  %v407_v34 = vshrl.u32 %v406_v33, 7  ;;  %s1463_s0 = smov [#allocation16]  }
  0x96   :  { %v152_v17 = vpack.c.bf16 %v151_v14, %v151_v14  ;;  %v1195_v18 = vld [vmem:[#allocation7 + $0x20] ss:$12 sps:$4 sm:$0xff]   ;;  %v1198_v20 = vld [vmem:[#allocation10 + $0x10] sm:$0xff]   ;;  %v1203_v25 = vld [vmem:[#allocation10 + $0x38] sm:$0xff]   ;;  %s960_s19 = sshll.u32 %s1463_s0, 4  ;;  %s961_s19 = int_to_ptr.vmem [resolvable:$true] %s960_s19 }
  0x97   :  { %210 = vmatpush1.bf16.msra.mxu0 %v1185_v5  ;;  %v1200_v22 = vld [vmem:[#allocation10 + $0x20] sm:$0xff]   ;;  %v1201_v23 = vld [vmem:[#allocation10 + $0x28] sm:$0xff]   ;;  %v1202_v24 = vld [vmem:[#allocation10 + $0x30] sm:$0xff]   ;;  %v408_v39 = vsub.s32 0, %v407_v34  ;;  %v416_v47 = vsub.s32 2, %v407_v34  ;;  %p1419_p9 = scmp.lt.s32.totalorder %s961_s19, %s961_s19 }
  0x98   :  { %323 = vmatprep.subr.bf16.mxu0 %v1188_v7  ;;  %1091 = vmatpush3.bf16.msra.mxu1 %v1193_v12  ;;  %v1204_v26 = vld [vmem:[#allocation13 + $0x40] sm:$0xff]   ;;  %v1221_v28 = vld [vmem:[#allocation11 + $0x8] sm:$0xff]   ;;  %v1222_v29 = vld [vmem:[#allocation11 + $0x10] sm:$0xff]  }
  0x99   :  { %1096 = vmatprep.subr.bf16.mxu1 %v1461_v1  ;;  %v1220_v27 = vld [vmem:[#allocation11] sm:$0xff]   ;;  %v1223_v30 = vld [vmem:[#allocation11 + $0x18] sm:$0xff]   ;;  %v1225_v32 = vld [vmem:[#allocation11 + $0x28] sm:$0xff]  }
  0x9a   :  { %979 = vmatmul.mubr.msk.bf16.vlgmr.msra.gmra.mrb[0].mxu0 %vm203_vm1, %v154_v9  ;;  %v1224_v31 = vld [vmem:[#allocation11 + $0x20] sm:$0xff]   ;;  %v404_v40 = vld [vmem:[%s1735_s4] sm:$0x7]  ;;  %v1206_v61 = vld [vmem:[#allocation13 + $0x48] sm:$0xff]  }
  0x9b   :  { %324 = vmatpush1.bf16.msra.mxu0 %v1186_v8  ;;  %355 = vmatprep.mubr.bf16.mxu0 %v1460_v0  ;;  %v409_v43 = vrot.slane %v404_v40, %v408_v39  ;;  %v417_v54 = vrot.slane %v404_v40, %v416_v47  ;;  %v1205_v57 = vld [vmem:[#allocation13] sm:$0xff]   ;;  %v1207_v2 = vld [vmem:[#allocation13 + $0x8] sm:$0xff]   ;;  %v1208_v4 = vld [vmem:[#allocation13 + $0x50] sm:$0xff]  }
  0x9c   :  { %325 = vmatprep.subr.bf16.mxu0 %v1191_v11  ;;  %1093 = vmatmul.mubr.msk.bf16.vlgmr.msra.gmra.mrb[0].mxu1 %vm203_vm1, %v154_v9  ;;  %v1209_v6 = vld [vmem:[#allocation13 + $0x10] sm:$0xff]   ;;  %v1210_v7 = vld [vmem:[#allocation13 + $0x58] sm:$0xff]   ;;  %v1212_v9 = vld [vmem:[#allocation13 + $0x60] sm:$0xff]   ;;  %v412_v11 = vsub.s32 1, %v407_v34 }
  0x9d   :  { %1097 = vmatpush3.bf16.msra.mxu1 %v1194_v15  ;;  %1100 = vmatprep.mubr.msk.bf16.mxu1 %vm1462_vm0, %v1461_v1  ;;  %v1211_v8 = vld [vmem:[#allocation13 + $0x18] sm:$0xff]   ;;  %v1213_v10 = vld [vmem:[#allocation13 + $0x20] sm:$0xff]   ;;  %v1214_v12 = vld [vmem:[#allocation13 + $0x68] sm:$0xff]  }
  0x9e   :  { %1098 = vmatprep.subr.bf16.mxu1 %v1461_v1  ;;  %v413_v14 = vrot.slane %v404_v40, %v412_v11  ;;  %v1216_v15 = vld [vmem:[#allocation13 + $0x70] sm:$0xff]   ;;  %v1229_v33 = vld [vmem:[#allocation14 + $0x8] sm:$0xff]   ;;  %v1235_v40 = vld [vmem:[#allocation14 + $0x38] sm:$0xff]  }
  0x9f   :  { %326 = vmatpush1.bf16.msra.mxu0 %v1189_v13  ;;  %v1215_v13 = vld [vmem:[#allocation13 + $0x28] sm:$0xff]   ;;  %v1230_v34 = vld [vmem:[#allocation14 + $0x10] sm:$0xff]  }
  0xa0   :  { %1104 = vmatprep.subr.bf16.mxu0 %v1461_v1 }
  0xa1   :  { %1099 = vmatpush3.bf16.msra.mxu1 %v1195_v18  ;;  %v1218_v18 = vld [vmem:[#allocation13 + $0x78] sm:$0xff]  }
  0xa2   :  { %987 = vmatmul.mubr.msk.bf16.vlgmr.msra.gmra.mrb[4].mxu0 %vm203_vm1, %v152_v17  ;;  %1124 = vmatprep.subr.bf16.mxu1 %v1461_v1 }
  0xa3   :  { %1105 = vmatpush3.bf16.msra.mxu0 %v1196_v16  ;;  %1120 = vmatprep.mubr.msk.bf16.mxu0 %vm1462_vm0, %v1461_v1  ;;  %v1217_v16 = vld [vmem:[#allocation13 + $0x30] sm:$0xff]  }
  0xa4   :  { %1106 = vmatprep.subr.bf16.mxu0 %v1461_v1  ;;  %1101 = vmatmul.mubr.msk.bf16.vlgmr.msra.gmra.mrb[4].mxu1 %vm203_vm1, %v152_v17 }
  0xa5   :  { %1140 = vmatprep.mubr.msk.bf16.mxu1 %vm1462_vm0, %v1461_v1  ;;  %1125 = vmatpush3.bf16.msra.mxu1 %v1220_v27 }
  0xa6   :  { %1126 = vmatprep.subr.bf16.mxu1 %v1461_v1 }
  0xa7   :  { %1107 = vmatpush3.bf16.msra.mxu0 %v1197_v19  ;;  %v1219_v19 = vld [vmem:[#allocation13 + $0x38] sm:$0xff]  }
  0xa8   :  { %1108 = vmatprep.subr.bf16.mxu0 %v1461_v1 }
  0xa9   :  { %1127 = vmatpush3.bf16.msra.mxu1 %v1221_v28 }
  0xaa   :  { %1128 = vmatprep.subr.bf16.mxu1 %v1461_v1 }
  0xab   :  { %1109 = vmatpush3.bf16.msra.mxu0 %v1198_v20 }
  0xac   :  { %1110 = vmatprep.subr.bf16.mxu0 %v1461_v1 }
  0xad   :  { %1129 = vmatpush3.bf16.msra.mxu1 %v1222_v29 }
  0xae   :  { %1130 = vmatprep.subr.bf16.mxu1 %v1461_v1 }
  0xaf   :  { %1111 = vmatpush3.bf16.msra.mxu0 %v1199_v21 }
  0xb0   :  { %1112 = vmatprep.subr.bf16.mxu0 %v1461_v1 }
  0xb1   :  { %1131 = vmatpush3.bf16.msra.mxu1 %v1223_v30 }
  0xb2   :  { %1132 = vmatprep.subr.bf16.mxu1 %v1461_v1 }
  0xb3   :  { %1113 = vmatpush3.bf16.msra.mxu0 %v1200_v22  ;;  %v1226_v22 = vld [vmem:[#allocation11 + $0x30] sm:$0xff]  }
  0xb4   :  { %1114 = vmatprep.subr.bf16.mxu0 %v1461_v1 }
  0xb5   :  { %1133 = vmatpush3.bf16.msra.mxu1 %v1224_v31  ;;  %v1228_v31 = vld [vmem:[#allocation14] sm:$0xff]  }
  0xb6   :  { %1134 = vmatprep.subr.bf16.mxu1 %v1461_v1 }
  0xb7   :  { %1115 = vmatpush3.bf16.msra.mxu0 %v1201_v23  ;;  %v1227_v23 = vld [vmem:[#allocation11 + $0x38] sm:$0xff]  }
  0xb8   :  { %1116 = vmatprep.subr.bf16.mxu0 %v1461_v1 }
  0xb9   :  { %1135 = vmatpush3.bf16.msra.mxu1 %v1225_v32 }
  0xba   :  { %1136 = vmatprep.subr.bf16.mxu1 %v1461_v1 }
  0xbb   :  { %1117 = vmatpush3.bf16.msra.mxu0 %v1202_v24  ;;  %v989_v24 = vld [vmem:[%s1737_s6] ss:$0 sm:$0xff] }
  0xbc   :  { %1118 = vmatprep.subr.bf16.mxu0 %v1461_v1 }
  0xbd   :  { %1137 = vmatpush3.bf16.msra.mxu1 %v1226_v22 }
  0xbe   :  { %1138 = vmatprep.subr.bf16.mxu1 %v1461_v1 }
  0xbf   :  { %1119 = vmatpush3.bf16.msra.mxu0 %v1203_v25 }
  0xc0   :  { %1057 = vmatprep.subr.bf16.mxu0 %v1204_v26 }
  0xc1   :  { %1139 = vmatpush3.bf16.msra.mxu1 %v1227_v23 }
  0xc2   :  { %1144 = vmatprep.subr.bf16.mxu1 %v1461_v1 }
 0x16d   :  { %v241_v35 = vpop.f32.mrb[0].mxu0 }
 0x16e   :  { %v243_v36 = vpop.f32.mrb[1].mxu0 }
 0x16f   :  { %v245_v37 = vpop.f32.mrb[2].mxu0  ;;  %v282_v41 = vpop.f32.mrb[0].mxu1 }
 0x170   :  { %v246_v38 = vpop.f32.mrb[3].mxu0  ;;  %v1094_v42 = vpop.f32.mrb[1].mxu1  ;;  %v1233_v37 = vld [vmem:[#allocation14 + $0x28] sm:$0xff]  }
 0x171   :  { %v285_v44 = vpop.f32.mrb[2].mxu1  ;;  %v1234_v38 = vld [vmem:[#allocation14 + $0x30] sm:$0xff]  }
 0x172   :  { %v1095_v46 = vpop.f32.mrb[3].mxu1 }
 0x175   :  { %v357_v45 = vpop.f32.mrb[4].mxu0 }
 0x176   :  { %v358_v48 = vadd.f32 %v357_v45, %v241_v35  ;;  %v359_v49 = vpop.f32.mrb[5].mxu0  ;;  %v1231_v35 = vld [vmem:[#allocation14 + $0x18] sm:$0xff]  }
 0x177   :  { %v360_v50 = vadd.f32 %v359_v49, %v243_v36  ;;  %v361_v51 = vpop.f32.mrb[6].mxu0  ;;  %v398_v56 = vpop.f32.mrb[4].mxu1  ;;  %v1232_v36 = vld [vmem:[#allocation14 + $0x20] sm:$0xff]  }
 0x178   :  { %v421_v52 = vadd.f32 %v409_v43, %v358_v48  ;;  %v362_v53 = vpop.f32.mrb[7].mxu0  ;;  %v399_v58 = vadd.f32 %v398_v56, %v282_v41  ;;  %v1102_v59 = vpop.f32.mrb[5].mxu1  ;;  %v1006_v41 = vld [vmem:[%s1740_s9] ss:$0 sm:$0xff] }
 0x179   :  { %v401_v62 = vpop.f32.mrb[6].mxu1  ;;  %v422_v17 = vadd.f32 %v413_v14, %v360_v50 }
 0x17a   :  { %v424_v55 = vmax.f32 %v421_v52, 0.0  ;;  %v423_v63 = vadd.f32 %v417_v54, %v399_v58  ;;  %v1103_v0 = vpop.f32.mrb[7].mxu1  ;;  %v1023_v54 = vld [vmem:[%s1742_s11] ss:$0 sm:$0xff]  ;;  %s1414_s11 = scalar_lea.vmem %s961_s19, 128 }
 0x17b   :  { %v425_v20 = vmax.f32 %v422_v17, 0.0  ;;  %v1032_v58 = vld [vmem:[%s1743_s12] ss:$0 sm:$0xff]  ;;  %p1415_p8 = scmp.ne.s32.totalorder %s961_s19, %s1414_s11  ;;  %p1420_p10 = scmp.lt.s32.totalorder %s1414_s11, %s1414_s11 }
 0x17c   :  { %v427_v60 = vpack.c.bf16 %v424_v55, %v424_v55  ;;  %v426_v3 = vmax.f32 %v423_v63, 0.0 }
 0x17d   :  { %v651_v21 = vpack.c.bf16 %v425_v20, %v425_v20  ;;  %p1421_p11 = por %p1420_p10, %p1419_p9 }
 0x17e   :  { %1121 = vmatmul.mubr.bf16.vlgmr.msra.gmra.mrb[8].mxu0 %v427_v60  ;;  %v652_v5 = vpack.c.bf16 %v426_v3, %v426_v3 }
 0x17f   :  { %1058 = vmatpush3.bf16.msra.mxu0 %v1205_v57  ;;  %p1422_p12 = pnand %p1421_p11, %p1415_p8 }
 0x180   :  { %1059 = vmatprep.subr.bf16.mxu0 %v1206_v61  ;;  %820 = vmatprep.mubr.bf16.mxu0 %v652_v5 }
 0x183   :  { %1060 = vmatpush3.bf16.msra.mxu0 %v1207_v2 }
 0x184   :  { %1061 = vmatprep.subr.bf16.mxu0 %v1208_v4 }
 0x187   :  { %1062 = vmatpush3.bf16.msra.mxu0 %v1209_v6 }
 0x188   :  { %1063 = vmatprep.subr.bf16.mxu0 %v1210_v7 }
 0x18b   :  { %1064 = vmatpush3.bf16.msra.mxu0 %v1211_v8 }
 0x18c   :  { %1065 = vmatprep.subr.bf16.mxu0 %v1212_v9 }
 0x18f   :  { %1066 = vmatpush3.bf16.msra.mxu0 %v1213_v10 }
 0x190   :  { %1067 = vmatprep.subr.bf16.mxu0 %v1214_v12 }
 0x193   :  { %1068 = vmatpush3.bf16.msra.mxu0 %v1215_v13 }
 0x194   :  { %1069 = vmatprep.subr.bf16.mxu0 %v1216_v15 }
 0x197   :  { %1070 = vmatpush3.bf16.msra.mxu0 %v1217_v16 }
 0x198   :  { %1071 = vmatprep.subr.bf16.mxu0 %v1218_v18 }
 0x19b   :  { %1072 = vmatpush3.bf16.msra.mxu0 %v1219_v19 }
 0x19e   :  { %821 = vmatmul.mubr.bf16.vlgmr.msra.gmra.mrb[12].mxu0 %v651_v21 }
 0x251   :  { %v533_v25 = vpop.f32.mrb[8].mxu0 }
 0x252   :  { %v534_v26 = vadd.f32 %v989_v24, %v533_v25  ;;  %v1122_v27 = vpop.f32.mrb[9].mxu0 }
 0x253   :  { %v536_v28 = vpop.f32.mrb[10].mxu0 }
 0x254   :  { %v539_v29 = vmax.f32 %v534_v26, 0.0  ;;  %v1123_v30 = vpop.f32.mrb[11].mxu0 }
 0x256   :  { %v540_v32 = vpack.c.bf16 %v539_v29, %v539_v29 }
 0x258   :  { %1141 = vmatmul.mubr.bf16.vlgmr.msra.gmra.mrb[8].mxu1 %v540_v32 }
 0x259   :  { %1145 = vmatpush3.bf16.msra.mxu1 %v1228_v31  ;;  %1160 = vmatprep.mubr.msk.bf16.mxu1 %vm1462_vm0, %v1461_v1 }
 0x25a   :  { %1146 = vmatprep.subr.bf16.mxu1 %v1461_v1 }
 0x25d   :  { %1147 = vmatpush3.bf16.msra.mxu1 %v1229_v33 }
 0x25e   :  { %1148 = vmatprep.subr.bf16.mxu1 %v1461_v1 }
 0x261   :  { %1149 = vmatpush3.bf16.msra.mxu1 %v1230_v34 }
 0x262   :  { %1150 = vmatprep.subr.bf16.mxu1 %v1461_v1 }
 0x265   :  { %1151 = vmatpush3.bf16.msra.mxu1 %v1231_v35 }
 0x266   :  { %1152 = vmatprep.subr.bf16.mxu1 %v1461_v1 }
 0x269   :  { %1153 = vmatpush3.bf16.msra.mxu1 %v1232_v36 }
 0x26a   :  { %1154 = vmatprep.subr.bf16.mxu1 %v1461_v1 }
 0x26d   :  { %1155 = vmatpush3.bf16.msra.mxu1 %v1233_v37 }
 0x26e   :  { %1156 = vmatprep.subr.bf16.mxu1 %v1461_v1 }
 0x271   :  { %v1073_v39 = vpop.f32.mrb[12].mxu0  ;;  %1157 = vmatpush3.bf16.msra.mxu1 %v1234_v38 }
 0x272   :  { %v1074_v42 = vpop.f32.mrb[13].mxu0  ;;  %1158 = vmatprep.subr.bf16.mxu1 %v1461_v1 }
 0x273   :  { %v1075_v43 = vadd.f32 %v1074_v42, %v1073_v39  ;;  %v1076_v44 = vpop.f32.mrb[14].mxu0 }
 0x274   :  { %v1077_v45 = vpop.f32.mrb[15].mxu0 }
 0x275   :  { %v823_v46 = vadd.f32 %v1075_v43, %v1006_v41  ;;  %1159 = vmatpush3.bf16.msra.mxu1 %v1235_v40 }
 0x277   :  { %v828_v47 = vmax.f32 %v823_v46, 0.0 }
 0x279   :  { %v829_v48 = vpack.c.bf16 %v828_v47, %v828_v47 }
 0x27b   :  { %1161 = vmatmul.mubr.bf16.vlgmr.msra.gmra.mrb[12].mxu1 %v829_v48 }
 0x32b   :  { %v639_v49 = vpop.f32.mrb[8].mxu1 }
 0x32c   :  { %v1142_v50 = vpop.f32.mrb[9].mxu1  ;;  %v645_v51 = vmul.f32 %v639_v49, %v639_v49 }
 0x32d   :  { %v642_v52 = vpop.f32.mrb[10].mxu1 }
 0x32e   :  { %646 = vadd.xlane.f32.xlu0 %v645_v51  ;;  %v1143_v53 = vpop.f32.mrb[11].mxu1 }
 0x34e   :  { %v935_v55 = vpop.f32.mrb[12].mxu1 }
 0x34f   :  { %v936_v1 = vadd.f32 %v1023_v54, %v935_v55  ;;  %v1162_v56 = vpop.f32.mrb[13].mxu1 }
 0x350   :  { %v938_v57 = vpop.f32.mrb[14].mxu1 }
 0x351   :  { %v941_v59 = vmax.f32 %v936_v1, 0.0  ;;  %v1163_v60 = vpop.f32.mrb[15].mxu1 }
 0x353   :  { %v949_v61 = vmul.f32 %v1032_v58, %v941_v59 }
 0x355   :  { %950 = vadd.xlane.f32.xlu0 %v949_v61 }
 0x3bb   :  { %v647_v62 = vpop.xlane.xlu0 %646 }
 0x3bc   :  { %v648_v63 = vmax.f32 %v647_v62, 1e-24 }
 0x3be   :  { %1236 = vrsqrt.f32 %v648_v63 }
 0x3c8   :  { %v1237_v0 = vpop.eup %1236 }
 0x3c9   :  { %v650_v2 = vmul.f32 %v1237_v0, %v639_v49 }
 0x3e2   :  { %v951_v3 = vpop.xlane.xlu0 %950 }
 0x3e3   :  { %v952_v4 = vmul.f32 %v951_v3, %v650_v2 }
 0x3e5   :  { %953 = vst [vmem:[#allocation16] sm:$0xff] %v952_v4 }
 0x3e6   :  { %1425 = shalt.err (!%p1422_p12)
}
 0x3e7   :  { %s1426_s25 = scalar_lea.hbm %s1744_s13, 128 }
 0x3e8   :  { %p1427_p13 = scmp.ne.s32.totalorder %s1744_s13, %s1426_s25  ;;  %p1430_p0 = scmp.lt.u32.totalorder %s1426_s25, %s1744_s13 }
 0x3ea   :  { %p1432_p1 = pnand %p1430_p0, %p1427_p13 }
 0x3ec   :  { %1435 = shalt.err (!%p1432_p1)
}
 0x3ed   :  { %963 = dma.vmem_to_hbm [thread:$0]  %s961_s19, 128, %s1744_s13, [#allocation4]  }
 0x3ee   :  { %1446 = dma.done.wait [#allocation4], 128  }
 0x3ef   :  { %1447 = vsyncadd [#allocation4], 4294967168 }
 0x3f0   :  { %967 = vsyncpa [#allocation3], 1 }
 0x3f1   :  { %968 = vsyncpa [#allocation6], 1 }
 0x3f2   :  { %969 = vsyncpa [#allocation9], 1 }
 0x3f3   :  { %970 = vsyncpa [#allocation12], 1 }
 0x3f4   :  { %971 = vsyncpa [#allocation15], 1 }
 0x3f5   :  { %972 = vsyncpa [#allocation4], 1 }

</bundles_post_ra>
